<compile_context>
chip_gen: v5e
topology: v5e:2x2
jax: 0.10.0
libtpu: 0.0.40
codegen_flags: <defaults>
</compile_context>

<pallas_src>
import jax
import jax.numpy as jnp
from jax.experimental import pallas as pl
from jax.experimental.pallas import tpu as pltpu

# ------------------------- model configuration -------------------------
EMB_SZS = [(10, 3), (8, 5)]                  # (num_embeddings, embedding_dim) per cat column
V_TOT   = sum(v for v, _ in EMB_SZS)         # 18 (stacked vocab for block-diag one-hot)
N_EMB   = sum(d for _, d in EMB_SZS)         # 8
N_CONT  = 6
LAYERS  = [32, 16]
OUT_SZ  = 4
SIZES   = [N_EMB + N_CONT] + LAYERS + [OUT_SZ]   # [14, 32, 16, 4]
EPS     = 1e-5


# ------------------------- fused Pallas kernel -------------------------
def tabular_kernel(cat_ref, cont_ref,
                   m_ref, w0c_ref, b0_ref,
                   w1_ref, b1_ref,
                   w2_ref, b2_ref,
                   out_ref):
    """Batch-on-lane layout.

    cat_ref : [2, Bt]        int32 categorical indices (col 0, col 1)
    cont_ref: [N_CONT, Bt]   continuous features (BN folded into w0c/b0)
    m_ref   : [H0, V_TOT]    folded embedding->layer0 matrix (transposed)
    w0c_ref : [H0, N_CONT]   folded continuous part of layer 0 (transposed)
    b0_ref  : [H0, 1]        folded bias
    w1_ref  : [H1, H0], b1_ref: [H1, 1]   (bn1 folded in)
    w2_ref  : [OUT, H1], b2_ref: [OUT, 1] (bn2 folded in)
    out_ref : [OUT, Bt]
    """
    bt = cat_ref.shape[1]

    # --- block-diagonal one-hot over the stacked vocabulary (one iota, one matmul) ---
    idx0 = cat_ref[0:1, :]                         # [1, Bt]
    idx1 = cat_ref[1:2, :] + EMB_SZS[0][0]         # [1, Bt], offset into stacked vocab
    iot = jax.lax.broadcasted_iota(jnp.int32, (V_TOT, bt), 0)
    onehot = ((iot == idx0) | (iot == idx1)).astype(jnp.float32)   # [V_TOT, Bt]

    # --- layer 0: embeddings-through-w0 + folded-BN continuous branch + ReLU ---
    h = (jnp.dot(m_ref[...], onehot, preferred_element_type=jnp.float32)
         + jnp.dot(w0c_ref[...], cont_ref[...], preferred_element_type=jnp.float32)
         + b0_ref[...])                                            # [H0, Bt]
    h = jnp.maximum(h, 0.0)

    # --- layer 1: (BN folded) Linear + ReLU ---
    h = jnp.dot(w1_ref[...], h, preferred_element_type=jnp.float32) + b1_ref[...]
    h = jnp.maximum(h, 0.0)

    # --- layer 2: (BN folded) Linear, no activation ---
    h = jnp.dot(w2_ref[...], h, preferred_element_type=jnp.float32) + b2_ref[...]

    out_ref[...] = h.astype(out_ref.dtype)


# ------------------------- parameter folding (wrapper side) -------------------------
def fold_params(params):
    """Fold eval-mode BatchNorms and the embedding tables into the Linear weights.

    Returns transposed ([n_out, n_in]) weights + column biases for the
    batch-on-lane kernel layout.
    """
    def bn_scale_shift(p):                       # p: [4, n] = (gamma, beta, mean, var)
        s = p[0] * jax.lax.rsqrt(p[3] + EPS)
        t = p[1] - p[2] * s
        return s, t

    w0, b0 = params["w0"], params["b0"][0]       # [14, 32], [32]
    w1, b1 = params["w1"], params["b1"][0]       # [32, 16], [16]
    w2, b2 = params["w2"], params["b2"][0]       # [16, 4],  [4]

    s_c, t_c = bn_scale_shift(params["bn_cont"])
    s1, t1 = bn_scale_shift(params["bn1"])
    s2, t2 = bn_scale_shift(params["bn2"])

    d0, d1 = EMB_SZS[0][1], EMB_SZS[1][1]
    w0_e0 = w0[0:d0]                              # [3, 32]
    w0_e1 = w0[d0:d0 + d1]                        # [5, 32]
    w0_c = w0[d0 + d1:]                           # [6, 32]

    # embeddings folded through layer 0: onehot(stacked) @ M == cat([e0,e1]) @ w0[:8]
    M = jnp.concatenate([params["emb0"] @ w0_e0,
                         params["emb1"] @ w0_e1], axis=0)          # [V_TOT, 32]
    # bn_cont folded into the continuous rows of w0 / b0
    W0c = w0_c * s_c[:, None]                                      # [6, 32]
    b0f = b0 + t_c @ w0_c                                          # [32]
    # bn1 folded into w1/b1, bn2 folded into w2/b2
    W1f = w1 * s1[:, None]
    b1f = b1 + t1 @ w1
    W2f = w2 * s2[:, None]
    b2f = b2 + t2 @ w2

    return dict(
        Mt=M.T.astype(jnp.float32),        # [32, 18]
        W0ct=W0c.T.astype(jnp.float32),    # [32, 6]
        b0t=b0f[:, None].astype(jnp.float32),
        W1t=W1f.T.astype(jnp.float32),     # [16, 32]
        b1t=b1f[:, None].astype(jnp.float32),
        W2t=W2f.T.astype(jnp.float32),     # [4, 16]
        b2t=b2f[:, None].astype(jnp.float32),
    )


def _round_up(x, m):
    return ((x + m - 1) // m) * m


def tabular_forward(x_cat, x_cont, params, tile_b=2048):
    """x_cat: [B, 2] int, x_cont: [B, N_CONT] float -> [B, OUT_SZ] (then .squeeze())."""
    B = x_cat.shape[0]
    f = fold_params(params)

    # lane-dense batch tile: multiple of 128, capped by VMEM-safe default
    tile_b = min(tile_b, _round_up(B, 128))
    b_pad = _round_up(B, tile_b)
    grid = (b_pad // tile_b,)

    # pad the batch (pad rows use index 0 / zero features; outputs are trimmed)
    x_cat_p = jnp.zeros((b_pad, 2), jnp.int32).at[:B].set(x_cat.astype(jnp.int32))
    x_cont_p = jnp.zeros((b_pad, N_CONT), jnp.float32).at[:B].set(x_cont.astype(jnp.float32))

    # batch-on-lane layout (layout plumbing done by XLA in the wrapper)
    cat_t = x_cat_p.T                              # [2, b_pad]
    cont_t = x_cont_p.T                            # [N_CONT, b_pad]

    weights = [f["Mt"], f["W0ct"], f["b0t"], f["W1t"], f["b1t"], f["W2t"], f["b2t"]]

    in_specs = [
        pl.BlockSpec((2, tile_b), lambda i: (0, i)),
        pl.BlockSpec((N_CONT, tile_b), lambda i: (0, i)),
    ] + [pl.BlockSpec(w.shape, lambda i: (0, 0)) for w in weights]   # weights stay resident
    out_specs = pl.BlockSpec((OUT_SZ, tile_b), lambda i: (0, i))

    flops = 2 * b_pad * (V_TOT * LAYERS[0] + N_CONT * LAYERS[0]
                         + LAYERS[0] * LAYERS[1] + LAYERS[1] * OUT_SZ)
    bytes_accessed = (cat_t.size * 4 + cont_t.size * 4 + b_pad * OUT_SZ * 4
                      + sum(int(w.size) * 4 for w in weights))

    out_t = pl.pallas_call(
        tabular_kernel,
        out_shape=jax.ShapeDtypeStruct((OUT_SZ, b_pad), jnp.float32),
        grid=grid,
        in_specs=in_specs,
        out_specs=out_specs,
        compiler_params=pltpu.CompilerParams(
            dimension_semantics=("parallel",),            # shards batch tiles across TCs (v7x)
            vmem_limit_bytes=32 * 1024 * 1024,            # explicit, safe on v5e/v6e/v7x
        ),
        cost_estimate=pl.CostEstimate(
            flops=int(flops), transcendentals=0, bytes_accessed=int(bytes_accessed)),
    )(cat_t, cont_t, *weights)

    out = out_t.T[:B]                                     # [B, OUT_SZ], lane-dense store in-kernel
    return jnp.squeeze(out)                               # matches torch .squeeze()


# ------------------------- pure-JAX reference (unfused math, for validation) -------------------------
def tabular_reference(x_cat, x_cont, params):
    def bn(x, p):
        return (x - p[2]) / jnp.sqrt(p[3] + EPS) * p[0] + p[1]

    e0 = params["emb0"][x_cat[:, 0]]
    e1 = params["emb1"][x_cat[:, 1]]
    xc = bn(x_cont, params["bn_cont"])
    x = jnp.concatenate([e0, e1, xc], axis=1)
    h = jnp.maximum(x @ params["w0"] + params["b0"][0], 0.0)
    h = bn(h, params["bn1"])
    h = jnp.maximum(h @ params["w1"] + params["b1"][0], 0.0)
    h = bn(h, params["bn2"])
    h = h @ params["w2"] + params["b2"][0]
    return jnp.squeeze(h)


# ------------------------- deterministic parameter init -------------------------
def init_params(key):
    keys = jax.random.split(key, 16)
    k = iter(keys)

    def linear(kw, kb, n_in, n_out):
        bound = 1.0 / jnp.sqrt(n_in)
        w = jax.random.uniform(kw, (n_in, n_out), jnp.float32, -bound, bound)
        b = jax.random.uniform(kb, (1, n_out), jnp.float32, -bound, bound)
        return w, b

    def bn_pack(kg, kb, n):
        gamma = jax.random.uniform(kg, (n,), jnp.float32, 0.5, 1.5)
        beta = 0.1 * jax.random.normal(kb, (n,), jnp.float32)
        mean = 0.1 * jax.random.normal(jax.random.fold_in(kg, 7), (n,), jnp.float32)
        var = jax.random.uniform(jax.random.fold_in(kb, 7), (n,), jnp.float32, 0.5, 1.5)
        return jnp.stack([gamma, beta, mean, var], axis=0)   # [4, n]

    params = {}
    params["emb0"] = jax.random.normal(next(k), EMB_SZS[0], jnp.float32)
    params["emb1"] = jax.random.normal(next(k), EMB_SZS[1], jnp.float32)
    params["bn_cont"] = bn_pack(next(k), next(k), N_CONT)
    params["w0"], params["b0"] = linear(next(k), next(k), SIZES[0], SIZES[1])
    params["bn1"] = bn_pack(next(k), next(k), SIZES[1])
    params["w1"], params["b1"] = linear(next(k), next(k), SIZES[1], SIZES[2])
    params["bn2"] = bn_pack(next(k), next(k), SIZES[2])
    params["w2"], params["b2"] = linear(next(k), next(k), SIZES[2], SIZES[3])
    return params


if __name__ == "__main__":
    key = jax.random.PRNGKey(0)
    k_params, k_cat0, k_cat1, k_cont = jax.random.split(key, 4)

    B = 2
    params = init_params(k_params)
    x_cat = jnp.stack(
        [jax.random.randint(k_cat0, (B,), 0, EMB_SZS[0][0]),
         jax.random.randint(k_cat1, (B,), 0, EMB_SZS[1][0])],
        axis=1,
    ).astype(jnp.int32)                                   # [B, 2] categorical indices
    x_cont = jax.random.normal(k_cont, (B, N_CONT), jnp.float32)

    out = tabular_forward(x_cat, x_cont, params)
    jax.block_until_ready(out)

    ref = tabular_reference(x_cat, x_cont, params)
    assert out.shape == ref.shape == (B, OUT_SZ), (out.shape, ref.shape)
    # folding BN / embeddings into the Linear weights changes the fp summation
    # order slightly; tolerance accounts for that.
    assert jnp.allclose(out, ref, atol=1e-4, rtol=1e-4), (out, ref)

    print("KERNEL_OK")
</pallas_src>

<mosaic_0001>
module attributes {stable_mosaic.version = 11 : i64} {
  func.func @tabular_kernel(%arg0: i32, %arg1: memref<2x128xi32, #tpu.memory_space<vmem>>, %arg2: memref<6x128xf32, #tpu.memory_space<vmem>>, %arg3: memref<32x18xf32, #tpu.memory_space<vmem>>, %arg4: memref<32x6xf32, #tpu.memory_space<vmem>>, %arg5: memref<32x1xf32, #tpu.memory_space<vmem>>, %arg6: memref<16x32xf32, #tpu.memory_space<vmem>>, %arg7: memref<16x1xf32, #tpu.memory_space<vmem>>, %arg8: memref<4x16xf32, #tpu.memory_space<vmem>>, %arg9: memref<4x1xf32, #tpu.memory_space<vmem>>, %arg10: memref<4x128xf32, #tpu.memory_space<vmem>>) attributes {dimension_semantics = [#tpu.dimension_semantics<parallel>], iteration_bounds = array<i64: 1>, scalar_prefetch = 0 : i64, scratch_operands = 0 : i64, tpu.core_type = #tpu.core_type<tc>, window_params = [{transform_indices = @transform_0, window_bounds = array<i64: 2, 128>}, {transform_indices = @transform_1, window_bounds = array<i64: 6, 128>}, {pipeline_mode = #tpu.pipeline_mode<synchronous>, transform_indices = @transform_2, window_bounds = array<i64: 32, 18>}, {pipeline_mode = #tpu.pipeline_mode<synchronous>, transform_indices = @transform_3, window_bounds = array<i64: 32, 6>}, {pipeline_mode = #tpu.pipeline_mode<synchronous>, transform_indices = @transform_4, window_bounds = array<i64: 32, 1>}, {pipeline_mode = #tpu.pipeline_mode<synchronous>, transform_indices = @transform_5, window_bounds = array<i64: 16, 32>}, {pipeline_mode = #tpu.pipeline_mode<synchronous>, transform_indices = @transform_6, window_bounds = array<i64: 16, 1>}, {pipeline_mode = #tpu.pipeline_mode<synchronous>, transform_indices = @transform_7, window_bounds = array<i64: 4, 16>}, {pipeline_mode = #tpu.pipeline_mode<synchronous>, transform_indices = @transform_8, window_bounds = array<i64: 4, 1>}, {transform_indices = @transform_9, window_bounds = array<i64: 4, 128>}]} {
    %c0 = arith.constant 0 : index
    %c0_0 = arith.constant 0 : index
    %0 = vector.load %arg1[%c0, %c0_0] : memref<2x128xi32, #tpu.memory_space<vmem>>, vector<1x128xi32>
    %c1 = arith.constant 1 : index
    %c0_1 = arith.constant 0 : index
    %1 = vector.load %arg1[%c1, %c0_1] : memref<2x128xi32, #tpu.memory_space<vmem>>, vector<1x128xi32>
    %c10_i32 = arith.constant 10 : i32
    %2 = vector.broadcast %c10_i32 : i32 to vector<1x128xi32>
    %3 = arith.addi %1, %2 : vector<1x128xi32>
    %4 = tpu.iota {dimensions = array<i32: 0>} : vector<18x128xi32>
    %5 = vector.broadcast %0 : vector<1x128xi32> to vector<18x128xi32>
    %6 = arith.cmpi eq, %4, %5 : vector<18x128xi32>
    %7 = vector.broadcast %3 : vector<1x128xi32> to vector<18x128xi32>
    %8 = arith.cmpi eq, %4, %7 : vector<18x128xi32>
    %9 = arith.ori %6, %8 : vector<18x128xi1>
    %10 = arith.extui %9 : vector<18x128xi1> to vector<18x128xi32>
    %11 = arith.sitofp %10 : vector<18x128xi32> to vector<18x128xf32>
    %c0_2 = arith.constant 0 : index
    %c0_3 = arith.constant 0 : index
    %12 = vector.load %arg3[%c0_2, %c0_3] : memref<32x18xf32, #tpu.memory_space<vmem>>, vector<32x18xf32>
    %cst = arith.constant dense<0.000000e+00> : vector<32x128xf32>
    %13 = tpu.matmul %12, %11, %cst {dimension_numbers = #tpu.dot_dimension_numbers<[1], [0], [0], [1], [0, 0, 1, 1], [], []>} : vector<32x18xf32>, vector<18x128xf32>, vector<32x128xf32> -> vector<32x128xf32>
    %c0_4 = arith.constant 0 : index
    %c0_5 = arith.constant 0 : index
    %14 = vector.load %arg4[%c0_4, %c0_5] : memref<32x6xf32, #tpu.memory_space<vmem>>, vector<32x6xf32>
    %c0_6 = arith.constant 0 : index
    %c0_7 = arith.constant 0 : index
    %15 = vector.load %arg2[%c0_6, %c0_7] : memref<6x128xf32, #tpu.memory_space<vmem>>, vector<6x128xf32>
    %cst_8 = arith.constant dense<0.000000e+00> : vector<32x128xf32>
    %16 = tpu.matmul %14, %15, %cst_8 {dimension_numbers = #tpu.dot_dimension_numbers<[1], [0], [0], [1], [0, 0, 1, 1], [], []>} : vector<32x6xf32>, vector<6x128xf32>, vector<32x128xf32> -> vector<32x128xf32>
    %17 = arith.addf %13, %16 : vector<32x128xf32>
    %c0_9 = arith.constant 0 : index
    %c0_10 = arith.constant 0 : index
    %18 = vector.load %arg5[%c0_9, %c0_10] : memref<32x1xf32, #tpu.memory_space<vmem>>, vector<32x1xf32>
    %19 = vector.broadcast %18 : vector<32x1xf32> to vector<32x128xf32>
    %20 = arith.addf %17, %19 : vector<32x128xf32>
    %cst_11 = arith.constant 0.000000e+00 : f32
    %21 = vector.broadcast %cst_11 : f32 to vector<32x128xf32>
    %22 = arith.maximumf %20, %21 : vector<32x128xf32>
    %c0_12 = arith.constant 0 : index
    %c0_13 = arith.constant 0 : index
    %23 = vector.load %arg6[%c0_12, %c0_13] : memref<16x32xf32, #tpu.memory_space<vmem>>, vector<16x32xf32>
    %cst_14 = arith.constant dense<0.000000e+00> : vector<16x128xf32>
    %24 = tpu.matmul %23, %22, %cst_14 {dimension_numbers = #tpu.dot_dimension_numbers<[1], [0], [0], [1], [0, 0, 1, 1], [], []>} : vector<16x32xf32>, vector<32x128xf32>, vector<16x128xf32> -> vector<16x128xf32>
    %c0_15 = arith.constant 0 : index
    %c0_16 = arith.constant 0 : index
    %25 = vector.load %arg7[%c0_15, %c0_16] : memref<16x1xf32, #tpu.memory_space<vmem>>, vector<16x1xf32>
    %26 = vector.broadcast %25 : vector<16x1xf32> to vector<16x128xf32>
    %27 = arith.addf %24, %26 : vector<16x128xf32>
    %cst_17 = arith.constant 0.000000e+00 : f32
    %28 = vector.broadcast %cst_17 : f32 to vector<16x128xf32>
    %29 = arith.maximumf %27, %28 : vector<16x128xf32>
    %c0_18 = arith.constant 0 : index
    %c0_19 = arith.constant 0 : index
    %30 = vector.load %arg8[%c0_18, %c0_19] : memref<4x16xf32, #tpu.memory_space<vmem>>, vector<4x16xf32>
    %cst_20 = arith.constant dense<0.000000e+00> : vector<4x128xf32>
    %31 = tpu.matmul %30, %29, %cst_20 {dimension_numbers = #tpu.dot_dimension_numbers<[1], [0], [0], [1], [0, 0, 1, 1], [], []>} : vector<4x16xf32>, vector<16x128xf32>, vector<4x128xf32> -> vector<4x128xf32>
    %c0_21 = arith.constant 0 : index
    %c0_22 = arith.constant 0 : index
    %32 = vector.load %arg9[%c0_21, %c0_22] : memref<4x1xf32, #tpu.memory_space<vmem>>, vector<4x1xf32>
    %33 = vector.broadcast %32 : vector<4x1xf32> to vector<4x128xf32>
    %34 = arith.addf %31, %33 : vector<4x128xf32>
    %c0_23 = arith.constant 0 : index
    %c0_24 = arith.constant 0 : index
    %35 = vector.load %arg10[%c0_23, %c0_24] : memref<4x128xf32, #tpu.memory_space<vmem>>, vector<4x128xf32>
    tpu.vector_store %arg10[%c0_23, %c0_24], %34 {strides = array<i32>} : memref<4x128xf32, #tpu.memory_space<vmem>>, vector<4x128xf32>,
    return
  }
  func.func @transform_0(%arg0: i32) -> (i32, i32) {
    %c0_i32 = arith.constant 0 : i32
    %c0_i32_0 = arith.constant 0 : i32
    return %c0_i32, %arg0 : i32, i32
  }
  func.func @transform_1(%arg0: i32) -> (i32, i32) {
    %c0_i32 = arith.constant 0 : i32
    %c0_i32_0 = arith.constant 0 : i32
    return %c0_i32, %arg0 : i32, i32
  }
  func.func @transform_2(%arg0: i32) -> (i32, i32) {
    %c0_i32 = arith.constant 0 : i32
    %c0_i32_0 = arith.constant 0 : i32
    %c0_i32_1 = arith.constant 0 : i32
    return %c0_i32, %c0_i32_0 : i32, i32
  }
  func.func @transform_3(%arg0: i32) -> (i32, i32) {
    %c0_i32 = arith.constant 0 : i32
    %c0_i32_0 = arith.constant 0 : i32
    %c0_i32_1 = arith.constant 0 : i32
    return %c0_i32, %c0_i32_0 : i32, i32
  }
  func.func @transform_4(%arg0: i32) -> (i32, i32) {
    %c0_i32 = arith.constant 0 : i32
    %c0_i32_0 = arith.constant 0 : i32
    %c0_i32_1 = arith.constant 0 : i32
    return %c0_i32, %c0_i32_0 : i32, i32
  }
  func.func @transform_5(%arg0: i32) -> (i32, i32) {
    %c0_i32 = arith.constant 0 : i32
    %c0_i32_0 = arith.constant 0 : i32
    %c0_i32_1 = arith.constant 0 : i32
    return %c0_i32, %c0_i32_0 : i32, i32
  }
  func.func @transform_6(%arg0: i32) -> (i32, i32) {
    %c0_i32 = arith.constant 0 : i32
    %c0_i32_0 = arith.constant 0 : i32
    %c0_i32_1 = arith.constant 0 : i32
    return %c0_i32, %c0_i32_0 : i32, i32
  }
  func.func @transform_7(%arg0: i32) -> (i32, i32) {
    %c0_i32 = arith.constant 0 : i32
    %c0_i32_0 = arith.constant 0 : i32
    %c0_i32_1 = arith.constant 0 : i32
    return %c0_i32, %c0_i32_0 : i32, i32
  }
  func.func @transform_8(%arg0: i32) -> (i32, i32) {
    %c0_i32 = arith.constant 0 : i32
    %c0_i32_0 = arith.constant 0 : i32
    %c0_i32_1 = arith.constant 0 : i32
    return %c0_i32, %c0_i32_0 : i32, i32
  }
  func.func @transform_9(%arg0: i32) -> (i32, i32) {
    %c0_i32 = arith.constant 0 : i32
    %c0_i32_0 = arith.constant 0 : i32
    return %c0_i32, %arg0 : i32, i32
  }
}

</mosaic_0001>

<bundles_post_ra>
// kernel: tpu_custom_call.1
= control target key start
LH: loop header
LB: loop body
LE: loop exit
PB: predicated region body
PF: predicated region fallthrough
CT: control target
= control target key end

     0   :  { %vm79_vm0 = vcmask 1045504   ;;  %vm66_vm1 = vcmask 48128   ;;  %v36_v2 = vlaneseq  ;;  %v340_v13 = vmov 0   ;;  %s470_s0 = inlined_call_operand.vmem [shape: s32[2,128], index: 0, kind: input, shape index: {}]   ;;  %s471_s1 = inlined_call_operand.vmem [shape: f32[6,128], index: 1, kind: input, shape index: {}]   ;;  %s472_s2 = inlined_call_operand.vmem [shape: f32[32,18], index: 2, kind: input, shape index: {}]   ;;  %s473_s3 = inlined_call_operand.vmem [shape: f32[32,6], index: 3, kind: input, shape index: {}]   ;;  %s474_s4 = inlined_call_operand.vmem [shape: f32[32,1], index: 4, kind: input, shape index: {}]   ;;  %s475_s5 = inlined_call_operand.vmem [shape: f32[16,32], index: 5, kind: input, shape index: {}]   ;;  %s476_s6 = inlined_call_operand.vmem [shape: f32[16,1], index: 6, kind: input, shape index: {}]   ;;  %s477_s7 = inlined_call_operand.vmem [shape: f32[4,16], index: 7, kind: input, shape index: {}]   ;;  %s478_s8 = inlined_call_operand.vmem [shape: f32[4,1], index: 8, kind: input, shape index: {}]   ;;  %s479_s9 = inlined_call_operand.hbm [shape: f32[4,128], index: 9, kind: output, shape index: {}]  }
   0x1   :  { %v65_v0 = vld [vmem:[%s471_s1] sm:$0x3f]  ;;  %v64_v1 = vld [vmem:[%s473_s3 + $0x18] sm:$0xff]  ;;  %v159_v9 = vld [vmem:[%s474_s4 + $0x8] sm:$0xff]  ;;  %311 = vset.pattern.permute.xlu1 %v340_v13  ;;  %310 = vset.pattern.permute.xlu0 %v340_v13  ;;  %vm125_vm2 = vcmask 1041408  }
   0x2   :  { %302 = vmatpush.msk.msra.mxu3 %vm79_vm0, %v65_v0  ;;  %v34_v3 = vld [vmem:[%s470_s0 + $0x1] sm:$0x1]  ;;  %287 = vmatpush.msk.msra.mxu0 %vm79_vm0, %v65_v0  ;;  %v37_v5 = vshrl.u32 %v36_v2, 7  ;;  %v313_v6 = vld [vmem:[%s470_s0] ss:$0 sm:$0xff]  ;;  %v161_v8 = vld [vmem:[%s474_s4 + $0x18] sm:$0xff] }
   0x3   :  { %291 = vmatmul.msk.f32.vlgmr.msra.gmra.mxu3 %vm66_vm1, %v64_v1  ;;  %v35_v4 = vadd.s32 10, %v34_v3  ;;  %v61_v7 = vld [vmem:[%s473_s3] sm:$0xff]  ;;  %179 = vperm.xlu0 %310, %v161_v8  }
   0x4   :  { %288 = vmatmul.msk.f32.vlgmr.msra.gmra.mxu0 %vm66_vm1, %v61_v7  ;;  %v39_v10 = vadd.s32 16, %v37_v5  ;;  %v38_v12 = vadd.s32 8, %v37_v5  ;;  %169 = vperm.xlu1 %311, %v159_v9  }
   0x5   :  { %v44_v11 = vperm.slane %v35_v4, 0  ;;  %312 = vset.pattern.permute.xlu2 %v340_v13 }
   0x6   :  { %vm43_vm3 = vcmp.eq.s32.totalorder %v39_v10, %v313_v6  ;;  %vm42_vm5 = vcmp.eq.s32.totalorder %v38_v12, %v313_v6 }
   0x7   :  { %vm47_vm4 = vcmp.eq.s32.totalorder %v39_v10, %v44_v11  ;;  %vm46_vm6 = vcmp.eq.s32.totalorder %v38_v12, %v44_v11 }
   0x8   :  { %14 = vsyncpa [#allocation3], 0  ;;  %vm41_vm8 = vcmp.eq.s32.totalorder %v37_v5, %v313_v6  ;;  %vm45_vm9 = vcmp.eq.s32.totalorder %v37_v5, %v44_v11  ;;  %v341_v14 = vmov 0.0   ;;  %v62_v16 = vld [vmem:[%s473_s3 + $0x8] sm:$0xff]  ;;  %v342_v17 = vmov 1.0   ;;  %v57_v18 = vld [vmem:[%s472_s2] sm:$0xff] }
   0x9   :  { %vm50_vm7 = vmor %vm43_vm3, %vm47_vm4  ;;  %vm112_vm12 = vcmask 146432   ;;  %v60_v19 = vld [vmem:[%s472_s2 + $0x18] sm:$0xff]  ;;  %v160_v20 = vld [vmem:[%s474_s4 + $0x10] sm:$0xff]  ;;  %vm204_vm13 = vcmask 261120   ;;  %vm243_vm14 = vcmask 130048   ;;  %s343_s0 = smov [#allocation2]  }
   0xa   :  { %v286_v15 = vsel %vm50_vm7, 1.0, %v341_v14  ;;  %vm49_vm10 = vmor %vm42_vm5, %vm46_vm6  ;;  %v158_v21 = vld [vmem:[%s474_s4] sm:$0xff]  ;;  %v63_v22 = vld [vmem:[%s473_s3 + $0x10] sm:$0xff]  ;;  %s273_s22 = sshll.u32 %s343_s0, 4  ;;  %s275_s24 = sshll.u32 %s479_s9, 4  ;;  %s274_s22 = int_to_ptr.vmem [resolvable:$true] %s273_s22  ;;  %s276_s24 = int_to_ptr.hbm [resolvable:$true] %s275_s24 }
   0xb   :  { %292 = vmatpush.msk.msra.mxu1 %vm125_vm2, %v286_v15  ;;  %303 = vmatpush.msk.msrb.mxu3 %vm125_vm2, %v286_v15  ;;  %vm48_vm11 = vmor %vm41_vm8, %vm45_vm9  ;;  %v58_v23 = vld [vmem:[%s472_s2 + $0x8] sm:$0xff]  ;;  %v237_v24 = vld [vmem:[%s478_s8] sm:$0xf] }
   0xc   :  { %289 = vmatmul.msk.f32.gmra.mxu0 %vm66_vm1, %v62_v16  ;;  %174 = vperm.xlu0 %310, %v160_v20   ;;  %v59_v25 = vld [vmem:[%s472_s2 + $0x10] sm:$0xff]  ;;  %v193_v30 = vld [vmem:[%s476_s6 + $0x8] sm:$0xff]  ;;  %v192_v37 = vld [vmem:[%s476_s6] sm:$0xff] }
   0xd   :  { %293 = vmatpush.msk.msra.mxu1 %vm49_vm10, %v342_v17  ;;  %304 = vmatpush.msk.msrb.mxu3 %vm49_vm10, %v342_v17  ;;  %v190_v52 = vld [vmem:[%s475_s5] sm:$0xff]  ;;  %v191_v53 = vld [vmem:[%s475_s5 + $0x8] sm:$0xff] }
   0xe   :  { %164 = vperm.xlu1 %311, %v158_v21   ;;  %201 = vperm.xlu2 %312, %v193_v30   ;;  %v236_v62 = vld [vmem:[%s477_s7] sm:$0xf] }
   0xf   :  { %294 = vmatpush.msk.msra.mxu1 %vm48_vm11, %v342_v17  ;;  %305 = vmatpush.msk.msrb.mxu3 %vm48_vm11, %v342_v17 }
  0x10   :  { %295 = vmatmul.msk.f32.vlgmr.msra.gmra.mxu1 %vm112_vm12, %v57_v18  ;;  %298 = vmatmul.msk.f32.vlgmr.msrb.gmra.mxu3 %vm112_vm12, %v60_v19 }
  0x14   :  { %290 = vmatmul.msk.f32.gmra.mxu0 %vm66_vm1, %v63_v22  ;;  %240 = vperm.xlu0 %310, %v237_v24  }
  0x16   :  { %196 = vperm.xlu2 %312, %v192_v37  }
  0x18   :  { %296 = vmatmul.msk.f32.gmra.mxu1 %vm112_vm12, %v58_v23 }
  0x20   :  { %297 = vmatmul.msk.f32.gmra.mxu1 %vm112_vm12, %v59_v25 }
  0x68   :  { %v202_v54 = vpop.permute.xlu2 %201 }
  0x70   :  { %v197_v56 = vpop.permute.xlu2 %196 }
  0x75   :  { %v180_v32 = vpop.permute.xlu0 %179 }
  0x76   :  { %v170_v34 = vpop.permute.xlu1 %169 }
  0x7e   :  { %v175_v44 = vpop.permute.xlu0 %174 }
  0x80   :  { %v165_v45 = vpop.permute.xlu1 %164 }
  0x81   :  { %v100_v26 = vpop.f32.mrf.mxu0 }
  0x86   :  { %v109_v27 = vpop.f32.mrf.mxu3  ;;  %v241_v63 = vpop.permute.xlu0 %240 }
  0x89   :  { %v103_v29 = vpop.f32.mrf.mxu0 }
  0x8d   :  { %v146_v28 = vpop.f32.mrf.mxu1 }
  0x8e   :  { %v147_v42 = vadd.f32 %v146_v28, %v100_v26 }
  0x90   :  { %v182_v48 = vadd.f32 %v165_v45, %v147_v42 }
  0x91   :  { %v106_v39 = vpop.f32.mrf.mxu0 }
  0x92   :  { %v186_v51 = vmax.f32 %v182_v48, 0.0 }
  0x93   :  { %v155_v31 = vpop.f32.mrf.mxu3 }
  0x94   :  { %v156_v33 = vadd.f32 %v155_v31, %v109_v27 }
  0x95   :  { %v149_v35 = vpop.f32.mrf.mxu1 }
  0x96   :  { %v185_v36 = vadd.f32 %v180_v32, %v156_v33  ;;  %v150_v40 = vadd.f32 %v149_v35, %v103_v29 }
  0x98   :  { %v189_v38 = vmax.f32 %v185_v36, 0.0  ;;  %v183_v47 = vadd.f32 %v170_v34, %v150_v40 }
  0x9a   :  { %223 = vmatpush.msra.mxu2 %v189_v38  ;;  %v187_v50 = vmax.f32 %v183_v47, 0.0 }
  0x9d   :  { %v152_v41 = vpop.f32.mrf.mxu1 }
  0x9e   :  { %v153_v43 = vadd.f32 %v152_v41, %v106_v39 }
  0xa0   :  { %v184_v46 = vadd.f32 %v175_v44, %v153_v43 }
  0xa2   :  { %v188_v49 = vmax.f32 %v184_v46, 0.0 }
  0xa4   :  { %224 = vmatpush.msra.mxu2 %v188_v49 }
  0xa6   :  { %225 = vmatpush.msra.mxu2 %v187_v50 }
  0xa8   :  { %226 = vmatpush.msra.mxu2 %v186_v51 }
  0xa9   :  { %299 = vmatmul.msk.f32.vlgmr.msra.gmra.mxu2 %vm204_vm13, %v190_v52 }
  0xb1   :  { %300 = vmatmul.msk.f32.gmra.mxu2 %vm204_vm13, %v191_v53 }
 0x12c   :  { %v228_v55 = vpop.f32.mrf.mxu2 }
 0x12d   :  { %v229_v58 = vadd.f32 %v228_v55, %v197_v56 }
 0x12f   :  { %v234_v61 = vmax.f32 %v229_v58, 0.0 }
 0x134   :  { %v231_v57 = vpop.f32.mrf.mxu2 }
 0x135   :  { %v232_v59 = vadd.f32 %v231_v57, %v202_v54 }
 0x137   :  { %v235_v60 = vmax.f32 %v232_v59, 0.0 }
 0x139   :  { %261 = vmatpush.msra.mxu3 %v235_v60 }
 0x13b   :  { %262 = vmatpush.msra.mxu3 %v234_v61 }
 0x13c   :  { %301 = vmatmul.msk.f32.vlgmr.msra.gmra.mxu3 %vm243_vm14, %v236_v62 }
 0x1bf   :  { %v264_v0 = vpop.f32.mrf.mxu3 }
 0x1c0   :  { %v265_v1 = vadd.f32 %v264_v0, %v241_v63 }
 0x1c2   :  { %267 = vst [vmem:[#allocation2] sm:$0xf] %v265_v1 }
 0x1c3   :  { %278 = dma.vmem_to_hbm [thread:$0]  %s274_s22, 64, %s276_s24, [#allocation3]  }
 0x1c4   :  { %338 = dma.done.wait [#allocation3], 64  }
 0x1c5   :  { %339 = vsyncadd [#allocation3], 4294967232 }
 0x1c6   :  { %283 = vsyncpa [#allocation3], 1 }

</bundles_post_ra>
